<compile_context>
chip_gen: v7x
topology: tpu7x:2x2x1
jax: 0.10.0
libtpu: 0.0.40
codegen_flags: <defaults>
</compile_context>

<pallas_src>
import math

import jax
import jax.numpy as jnp
from jax.experimental import pallas as pl
from jax.experimental.pallas import tpu as pltpu

_CPAD = 8  # packed-constant contraction width (3 used: log-binom, k, K-1-k; rest zero-pad)


def _make_kernel(eps: float, emit_nk: bool):
    def kernel(x_ref, w_ref, b_ref, c_ref, logits_ref, pt_ref):
        x = x_ref[...]                                    # (T, D)  f32 or bf16
        w = w_ref[...]                                    # (2, D)  same dtype as x

        # Both linear heads in one rhs-transposed MXU matmul -> lane-dense (2, T) f32:
        #   z[h, n] = sum_d w[h, d] * x[n, d]
        z = jax.lax.dot_general(
            w, x, (((1,), (1,)), ((), ())),
            preferred_element_type=jnp.float32) + b_ref[...]          # (2, T)

        z_param = z[0:1, :]                               # (1, T) lane-dense
        z_tau = z[1:2, :]                                 # (1, T)

        # param = sigmoid(L_param(x)); exact divide on a tiny (1, T) vector.
        param = 1.0 / (1.0 + jnp.exp(-z_param))           # (1, T)

        # softplus(L_tau(x)) (stable form); tau = 1 / (1 + softplus).
        sp = jnp.maximum(z_tau, 0.0) + jnp.log(1.0 + jnp.exp(-jnp.abs(z_tau)))
        inv_tau = 1.0 + sp                                # == 1/tau
        tau = 1.0 / inv_tau                               # (1, T)

        lp = jnp.log(param + eps)                         # (1, T)
        lq = jnp.log(1.0 - param + eps)                   # (1, T)

        # Binomial log-PMF, temperature-scaled, as a single MXU matmul:
        #   logits[k, n] = (logC[k] + k*lp[n] + (K-1-k)*lq[n]) * inv_tau[n]
        #               =  C[k, :] @ V[:, n]
        #   C = [logC | k | K-1-k | 0...]   (K, _CPAD)   constant, VMEM-resident
        #   V = [inv_tau; lp*inv_tau; lq*inv_tau; 0...]   (_CPAD, T)
        t = x.shape[0]
        v = jnp.concatenate(
            [inv_tau, lp * inv_tau, lq * inv_tau,
             jnp.zeros((_CPAD - 3, t), jnp.float32)], axis=0)         # (_CPAD, T)
        logits_t = jax.lax.dot_general(
            c_ref[...], v, (((1,), (0,)), ((), ())),
            preferred_element_type=jnp.float32,
            precision=jax.lax.Precision.HIGHEST)                      # (K, T)

        if emit_nk:
            # K % 128 == 0: transpose in-kernel (XLU) and emit module-layout (T, K) blocks,
            # avoiding any XLA-side HBM round-trip for the transpose.
            logits_ref[...] = logits_t.T.astype(logits_ref.dtype)
        else:
            logits_ref[...] = logits_t.astype(logits_ref.dtype)       # lane-dense (K, T)

        # Single full-block store for [param; tau] (no sublane-masked vst.msk).
        pt_ref[...] = jnp.concatenate([param, tau], axis=0).astype(pt_ref.dtype)

    return kernel


def _auto_tile(N, D, K, x_itemsize, out_itemsize, tile_n):
    """Largest 128-multiple batch tile that (a) fits ~75% of this generation's VMEM when
    double-buffered and (b) leaves the grid with >= 2 steps so both v7x TensorCores work."""
    try:
        vmem_cap = int(pltpu.get_tpu_info().vmem_capacity_bytes)
    except Exception:                                     # CPU / interpret / old runtime
        vmem_cap = 64 << 20                               # conservative (v7x per-TC)
    cap = (vmem_cap * 3) // 4                             # headroom for compiler scratch

    def est(t):
        io = t * (D * x_itemsize + K * out_itemsize + 2 * 4)      # x + logits + pt tiles
        resident = 2 * D * x_itemsize + 2 * 4 + K * _CPAD * 4     # W, b, packed constants
        interm = (K + _CPAD + 4) * t * 4                           # f32 logits/V/z temporaries
        return 2 * io + resident + interm                          # double-buffered pipeline

    if N <= 128:
        return N, cap
    half = max(128, (pl.cdiv(N, 2) // 128) * 128)         # keep >= 2 grid steps
    t = max(128, min(tile_n, half, (N // 128) * 128))
    t = (t // 128) * 128
    while t > 128 and est(t) > cap:
        t -= 128
    return t, cap


def _run(x, w_t, b, c, *, eps, tile_n, logits_dtype, emit_nk):
    N, D = x.shape
    K = c.shape[0]
    x_isz = jnp.dtype(x.dtype).itemsize
    o_isz = jnp.dtype(logits_dtype).itemsize
    tile, vmem_limit = _auto_tile(N, D, K, x_isz, o_isz, tile_n)
    grid = (pl.cdiv(N, tile),)

    w_t = w_t.astype(x.dtype)      # matching MXU operand dtypes (bf16 x halves HBM traffic)

    if emit_nk:
        logits_spec = pl.BlockSpec((tile, K), lambda i: (i, 0))       # module layout
        logits_shape = jax.ShapeDtypeStruct((N, K), logits_dtype)
    else:
        logits_spec = pl.BlockSpec((K, tile), lambda i: (0, i))       # lane-dense layout
        logits_shape = jax.ShapeDtypeStruct((K, N), logits_dtype)

    return pl.pallas_call(
        _make_kernel(eps, emit_nk),
        grid=grid,
        in_specs=[
            pl.BlockSpec((tile, D), lambda i: (i, 0)),     # x: streamed over the batch
            pl.BlockSpec((2, D), lambda i: (0, 0)),        # W              (VMEM-resident)
            pl.BlockSpec((2, 1), lambda i: (0, 0)),        # b              (VMEM-resident)
            pl.BlockSpec((K, _CPAD), lambda i: (0, 0)),    # packed constants (resident)
        ],
        out_specs=(
            logits_spec,
            pl.BlockSpec((2, tile), lambda i: (0, i)),     # [param; tau], lane-dense
        ),
        out_shape=(
            logits_shape,
            jax.ShapeDtypeStruct((2, N), jnp.float32),
        ),
        compiler_params=pltpu.CompilerParams(
            dimension_semantics=("parallel",),             # shard grid across v7x's 2 TCs
            vmem_limit_bytes=int(vmem_limit),
        ),
    )(x, w_t, b, c)


def unimodal_logits_head_t(x, w_t, b, c, *, eps: float = 1e-6, tile_n: int = 1024,
                           logits_dtype=jnp.float32):
    """Lane-dense (fast) contract: returns (logits^T (K, N), [param; tau] (2, N))."""
    return _run(x, w_t, b, c, eps=eps, tile_n=tile_n,
                logits_dtype=logits_dtype, emit_nk=False)


def unimodal_logits_head(x, w_t, b, c, *, eps: float = 1e-6, tile_n: int = 1024,
                         logits_dtype=jnp.float32):
    """Module-shaped outputs: logits (N, K), param (N, 1), tau (N, 1)."""
    K = c.shape[0]
    if K % 128 == 0:
        # Lane-aligned K: (N, K) is produced directly by an in-kernel XLU transpose,
        # so no extra HBM round-trip is paid for the module layout.
        logits, pt = _run(x, w_t, b, c, eps=eps, tile_n=tile_n,
                          logits_dtype=logits_dtype, emit_nk=True)
    else:
        # K < 128: keep the kernel's writeback lane-dense and pay one XLA transpose here.
        # Perf-sensitive consumers should use unimodal_logits_head_t and keep the slabs.
        logits_t, pt = _run(x, w_t, b, c, eps=eps, tile_n=tile_n,
                            logits_dtype=logits_dtype, emit_nk=False)
        logits = logits_t.T
    return logits, pt[0, :, None], pt[1, :, None]


def init_params(key, in_features: int, num_logits: int):
    """PyTorch-Linear-style init for the two heads + host-precomputed packed constants."""
    kp_w, kp_b, kt_w, kt_b = jax.random.split(key, 4)
    bound = 1.0 / math.sqrt(in_features)
    w_param = jax.random.uniform(kp_w, (1, in_features), jnp.float32, -bound, bound)
    w_tau = jax.random.uniform(kt_w, (1, in_features), jnp.float32, -bound, bound)
    b_param = jax.random.uniform(kp_b, (1, 1), jnp.float32, -bound, bound)
    b_tau = jax.random.uniform(kt_b, (1, 1), jnp.float32, -bound, bound)
    w_t = jnp.concatenate([w_param, w_tau], axis=0)       # (2, D): row 0 param, row 1 tau
    b = jnp.concatenate([b_param, b_tau], axis=0)         # (2, 1)

    K = num_logits
    # log C(K-1, k) via lgamma (no f32 overflow for large K, no in-kernel log), packed with
    # k and K-1-k into one (K, _CPAD) constant for the in-kernel MXU matmul.
    log_binom = [math.lgamma(K) - math.lgamma(k + 1) - math.lgamma(K - k) for k in range(K)]
    idx = jnp.arange(K, dtype=jnp.float32)
    c = jnp.zeros((K, _CPAD), jnp.float32)
    c = c.at[:, 0].set(jnp.asarray(log_binom, jnp.float32))
    c = c.at[:, 1].set(idx)
    c = c.at[:, 2].set((K - 1.0) - idx)
    return w_t, b, c


def reference(x, w_t, b, num_logits, eps=1e-6):
    """Pure-JAX port of the PyTorch forward (binomial, tau_mode='learn_fn')."""
    K = num_logits
    z = x @ w_t.T + b[:, 0][None, :]                      # (N, 2)
    param = jax.nn.sigmoid(z[:, 0:1])
    tau = 1.0 / (1.0 + jax.nn.softplus(z[:, 1:2]))
    idx = jnp.arange(K, dtype=jnp.float32)[None, :]
    binom = jnp.array([math.comb(K - 1, k) for k in range(K)], jnp.float32)[None, :]
    log_f = (jnp.log(binom) + idx * jnp.log(param + eps)
             + (K - 1 - idx) * jnp.log(1.0 - param + eps))
    return log_f / tau, param, tau


if __name__ == "__main__":
    key = jax.random.PRNGKey(0)
    kx, kw = jax.random.split(key)

    # --- K < 128: lane-dense kernel output; module wrapper transposes outside ---
    N, D, K = 256, 32, 16
    x = jax.random.normal(kx, (N, D), jnp.float32)
    w_t, b, c = init_params(kw, D, K)

    logits, param, tau = unimodal_logits_head(x, w_t, b, c)
    jax.block_until_ready((logits, param, tau))
    assert logits.shape == (N, K) and param.shape == (N, 1) and tau.shape == (N, 1)

    r_logits, r_param, r_tau = reference(x, w_t, b, K)
    assert jnp.allclose(logits, r_logits, atol=2e-3, rtol=2e-3), \
        float(jnp.max(jnp.abs(logits - r_logits)))
    assert jnp.allclose(param, r_param, atol=1e-4, rtol=1e-4)
    assert jnp.allclose(tau, r_tau, atol=1e-4, rtol=1e-4)

    # Lane-dense (perf) contract.
    logits_t, pt = unimodal_logits_head_t(x, w_t, b, c)
    jax.block_until_ready((logits_t, pt))
    assert logits_t.shape == (K, N) and pt.shape == (2, N)
    assert jnp.allclose(logits_t.T, r_logits, atol=2e-3, rtol=2e-3)

    # --- K multiple of 128: module-layout (N, K) emitted via in-kernel transpose ---
    K2 = 128
    w_t2, b2, c2 = init_params(kw, D, K2)
    logits2, param2, tau2 = unimodal_logits_head(x, w_t2, b2, c2)
    jax.block_until_ready((logits2, param2, tau2))
    r2_logits, r2_param, r2_tau = reference(x, w_t2, b2, K2)
    assert logits2.shape == (N, K2)
    assert jnp.allclose(logits2, r2_logits, atol=1e-2, rtol=2e-3), \
        float(jnp.max(jnp.abs(logits2 - r2_logits)))
    assert jnp.allclose(param2, r2_param, atol=1e-4, rtol=1e-4)
    assert jnp.allclose(tau2, r2_tau, atol=1e-4, rtol=1e-4)

    # --- bf16 input + bf16 logits output (halves both dominant HBM streams) ---
    xb = x.astype(jnp.bfloat16)
    wb = w_t.astype(jnp.bfloat16)
    logits_b, param_b, tau_b = unimodal_logits_head(xb, wb, b, c,
                                                    logits_dtype=jnp.bfloat16)
    jax.block_until_ready((logits_b, param_b, tau_b))
    rb_logits, rb_param, rb_tau = reference(xb.astype(jnp.float32),
                                            wb.astype(jnp.float32), b, K)
    assert logits_b.dtype == jnp.bfloat16
    assert jnp.allclose(logits_b.astype(jnp.float32), rb_logits, atol=0.5, rtol=5e-2)
    assert jnp.allclose(param_b, rb_param, atol=1e-2, rtol=1e-2)
    assert jnp.allclose(tau_b, rb_tau, atol=1e-2, rtol=1e-2)

    print("KERNEL_OK")
</pallas_src>

<mosaic_0001>
module attributes {stable_mosaic.version = 11 : i64} {
  func.func @kernel(%arg0: i32, %arg1: memref<128x32xf32, #tpu.memory_space<vmem>>, %arg2: memref<2x32xf32, #tpu.memory_space<vmem>>, %arg3: memref<2x1xf32, #tpu.memory_space<vmem>>, %arg4: memref<16x8xf32, #tpu.memory_space<vmem>>, %arg5: memref<16x128xf32, #tpu.memory_space<vmem>>, %arg6: memref<2x128xf32, #tpu.memory_space<vmem>>) attributes {dimension_semantics = [#tpu.dimension_semantics<parallel>], iteration_bounds = array<i64: 2>, scalar_prefetch = 0 : i64, scratch_operands = 0 : i64, tpu.core_type = #tpu.core_type<tc>, window_params = [{transform_indices = @transform_0, window_bounds = array<i64: 128, 32>}, {pipeline_mode = #tpu.pipeline_mode<synchronous>, transform_indices = @transform_1, window_bounds = array<i64: 2, 32>}, {pipeline_mode = #tpu.pipeline_mode<synchronous>, transform_indices = @transform_2, window_bounds = array<i64: 2, 1>}, {pipeline_mode = #tpu.pipeline_mode<synchronous>, transform_indices = @transform_3, window_bounds = array<i64: 16, 8>}, {transform_indices = @transform_4, window_bounds = array<i64: 16, 128>}, {transform_indices = @transform_5, window_bounds = array<i64: 2, 128>}]} {
    %c0 = arith.constant 0 : index
    %c0_0 = arith.constant 0 : index
    %0 = vector.load %arg1[%c0, %c0_0] : memref<128x32xf32, #tpu.memory_space<vmem>>, vector<128x32xf32>
    %c0_1 = arith.constant 0 : index
    %c0_2 = arith.constant 0 : index
    %1 = vector.load %arg2[%c0_1, %c0_2] : memref<2x32xf32, #tpu.memory_space<vmem>>, vector<2x32xf32>
    %cst = arith.constant dense<0.000000e+00> : vector<2x128xf32>
    %2 = tpu.matmul %1, %0, %cst {dimension_numbers = #tpu.dot_dimension_numbers<[1], [1], [0], [0], [0, 0, 1, 0], [], []>} : vector<2x32xf32>, vector<128x32xf32>, vector<2x128xf32> -> vector<2x128xf32>
    %c0_3 = arith.constant 0 : index
    %c0_4 = arith.constant 0 : index
    %3 = vector.load %arg3[%c0_3, %c0_4] : memref<2x1xf32, #tpu.memory_space<vmem>>, vector<2x1xf32>
    %4 = vector.broadcast %3 : vector<2x1xf32> to vector<2x128xf32>
    %5 = arith.addf %2, %4 : vector<2x128xf32>
    %6 = vector.extract_strided_slice %5 {offsets = [0, 0], sizes = [1, 128], strides = [1, 1]} : vector<2x128xf32> to vector<1x128xf32>
    %7 = vector.extract_strided_slice %5 {offsets = [1, 0], sizes = [1, 128], strides = [1, 1]} : vector<2x128xf32> to vector<1x128xf32>
    %cst_5 = arith.constant 0.000000e+00 : f32
    %8 = vector.broadcast %cst_5 : f32 to vector<1x128xf32>
    %9 = arith.subf %8, %6 : vector<1x128xf32>
    %10 = math.exp %9 : vector<1x128xf32>
    %cst_6 = arith.constant 1.000000e+00 : f32
    %11 = vector.broadcast %cst_6 : f32 to vector<1x128xf32>
    %12 = arith.addf %11, %10 : vector<1x128xf32>
    %cst_7 = arith.constant 1.000000e+00 : f32
    %13 = vector.broadcast %cst_7 : f32 to vector<1x128xf32>
    %14 = arith.divf %13, %12 : vector<1x128xf32>
    %cst_8 = arith.constant 0.000000e+00 : f32
    %15 = vector.broadcast %cst_8 : f32 to vector<1x128xf32>
    %16 = arith.maximumf %7, %15 : vector<1x128xf32>
    %17 = math.absf %7 : vector<1x128xf32>
    %cst_9 = arith.constant 0.000000e+00 : f32
    %18 = vector.broadcast %cst_9 : f32 to vector<1x128xf32>
    %19 = arith.subf %18, %17 : vector<1x128xf32>
    %20 = math.exp %19 : vector<1x128xf32>
    %cst_10 = arith.constant 1.000000e+00 : f32
    %21 = vector.broadcast %cst_10 : f32 to vector<1x128xf32>
    %22 = arith.addf %21, %20 : vector<1x128xf32>
    %23 = math.log %22 : vector<1x128xf32>
    %24 = arith.addf %16, %23 : vector<1x128xf32>
    %cst_11 = arith.constant 1.000000e+00 : f32
    %25 = vector.broadcast %cst_11 : f32 to vector<1x128xf32>
    %26 = arith.addf %25, %24 : vector<1x128xf32>
    %cst_12 = arith.constant 1.000000e+00 : f32
    %27 = vector.broadcast %cst_12 : f32 to vector<1x128xf32>
    %28 = arith.divf %27, %26 : vector<1x128xf32>
    %cst_13 = arith.constant 9.99999997E-7 : f32
    %29 = vector.broadcast %cst_13 : f32 to vector<1x128xf32>
    %30 = arith.addf %14, %29 : vector<1x128xf32>
    %31 = math.log %30 : vector<1x128xf32>
    %cst_14 = arith.constant 1.000000e+00 : f32
    %32 = vector.broadcast %cst_14 : f32 to vector<1x128xf32>
    %33 = arith.subf %32, %14 : vector<1x128xf32>
    %cst_15 = arith.constant 9.99999997E-7 : f32
    %34 = vector.broadcast %cst_15 : f32 to vector<1x128xf32>
    %35 = arith.addf %33, %34 : vector<1x128xf32>
    %36 = math.log %35 : vector<1x128xf32>
    %37 = arith.mulf %31, %26 : vector<1x128xf32>
    %38 = arith.mulf %36, %26 : vector<1x128xf32>
    %cst_16 = arith.constant 0.000000e+00 : f32
    %39 = vector.broadcast %cst_16 : f32 to vector<5x128xf32>
    %40 = tpu.concatenate %26, %37, %38, %39 in 0 : vector<1x128xf32>, vector<1x128xf32>, vector<1x128xf32>, vector<5x128xf32> -> vector<8x128xf32>
    %c0_17 = arith.constant 0 : index
    %c0_18 = arith.constant 0 : index
    %41 = vector.load %arg4[%c0_17, %c0_18] : memref<16x8xf32, #tpu.memory_space<vmem>>, vector<16x8xf32>
    %cst_19 = arith.constant dense<0.000000e+00> : vector<16x128xf32>
    %42 = tpu.matmul %41, %40, %cst_19 {dimension_numbers = #tpu.dot_dimension_numbers<[1], [0], [0], [1], [0, 0, 1, 1], [], []>, precision = #tpu.contract_precision<fp32>} : vector<16x8xf32>, vector<8x128xf32>, vector<16x128xf32> -> vector<16x128xf32>
    %c0_20 = arith.constant 0 : index
    %c0_21 = arith.constant 0 : index
    %43 = vector.load %arg5[%c0_20, %c0_21] : memref<16x128xf32, #tpu.memory_space<vmem>>, vector<16x128xf32>
    tpu.vector_store %arg5[%c0_20, %c0_21], %42 {strides = array<i32>} : memref<16x128xf32, #tpu.memory_space<vmem>>, vector<16x128xf32>,
    %44 = tpu.concatenate %14, %28 in 0 : vector<1x128xf32>, vector<1x128xf32> -> vector<2x128xf32>
    %c0_22 = arith.constant 0 : index
    %c0_23 = arith.constant 0 : index
    %45 = vector.load %arg6[%c0_22, %c0_23] : memref<2x128xf32, #tpu.memory_space<vmem>>, vector<2x128xf32>
    tpu.vector_store %arg6[%c0_22, %c0_23], %44 {strides = array<i32>} : memref<2x128xf32, #tpu.memory_space<vmem>>, vector<2x128xf32>,
    return
  }
  func.func @transform_0(%arg0: i32) -> (i32, i32) {
    %c0_i32 = arith.constant 0 : i32
    %c0_i32_0 = arith.constant 0 : i32
    return %arg0, %c0_i32 : i32, i32
  }
  func.func @transform_1(%arg0: i32) -> (i32, i32) {
    %c0_i32 = arith.constant 0 : i32
    %c0_i32_0 = arith.constant 0 : i32
    %c0_i32_1 = arith.constant 0 : i32
    return %c0_i32, %c0_i32_0 : i32, i32
  }
  func.func @transform_2(%arg0: i32) -> (i32, i32) {
    %c0_i32 = arith.constant 0 : i32
    %c0_i32_0 = arith.constant 0 : i32
    %c0_i32_1 = arith.constant 0 : i32
    return %c0_i32, %c0_i32_0 : i32, i32
  }
  func.func @transform_3(%arg0: i32) -> (i32, i32) {
    %c0_i32 = arith.constant 0 : i32
    %c0_i32_0 = arith.constant 0 : i32
    %c0_i32_1 = arith.constant 0 : i32
    return %c0_i32, %c0_i32_0 : i32, i32
  }
  func.func @transform_4(%arg0: i32) -> (i32, i32) {
    %c0_i32 = arith.constant 0 : i32
    %c0_i32_0 = arith.constant 0 : i32
    return %c0_i32, %arg0 : i32, i32
  }
  func.func @transform_5(%arg0: i32) -> (i32, i32) {
    %c0_i32 = arith.constant 0 : i32
    %c0_i32_0 = arith.constant 0 : i32
    return %c0_i32, %arg0 : i32, i32
  }
}

</mosaic_0001>

<bundles_post_ra>
// kernel: tpu_custom_call.1
= control target key start
LH: loop header
LB: loop body
LE: loop exit
PB: predicated region body
PF: predicated region fallthrough
CT: control target
= control target key end

     0   :  { %11 = vsyncpa [#allocation3], 0  ;;  %s1628_s0 = inlined_call_operand.vmem [shape: f32[256,32], index: 0, kind: input, shape index: {}]   ;;  %s1629_s1 = inlined_call_operand.vmem [shape: f32[2,32], index: 1, kind: input, shape index: {}]   ;;  %s1630_s2 = inlined_call_operand.vmem [shape: f32[2,1], index: 2, kind: input, shape index: {}]   ;;  %s1631_s3 = inlined_call_operand.vmem [shape: f32[16,8], index: 3, kind: input, shape index: {}]   ;;  %s1632_s4 = inlined_call_operand.hbm [shape: f32[16,256], index: 4, kind: output, shape index: {0}]   ;;  %s1633_s5 = inlined_call_operand.hbm [shape: f32[2,256], index: 5, kind: output, shape index: {1}]  }
   0x1   :  { %13 = vsyncpa [#allocation3 + $0x1], 0 }
   0x2   :  { %14 = vsyncpa [#allocation5], 0 }
   0x3   :  { %16 = vsyncpa [#allocation5 + $0x1], 0  ;;  %s1424_s18 = smov 0   ;;  %s1426_s19 = smov 0  }
   0x4   :  { %s1428_s20 = smov 0   ;;  %s1430_s21 = smov 0  }
   0x5 LB: > { %s1445_s22 = sadd.s32 4294967295, %s1383_s21   ;;  %s1050_s23 = sadd.s32 4294967294, %s1383_s21   ;;  %s1383_s21 = sphi %s1430_s21, %s1641_s21   ;;  %s1379_s20 = sphi %s1428_s20, %s1640_s20   ;;  %s1375_s19 = sphi %s1426_s19, %s1639_s19   ;;  %s1371_s18 = sphi %s1424_s18, %s1638_s18  }
   0x6   : > { %s1449_s24 = sadd.s32 1, %s1383_s21   ;;  %s118_s25 = sadd.s32 1, %s1379_s20 }
   0x7   : > { %s115_s26 = ssub.s32 %s1383_s21, %s1449_s24  ;;  %p128_p0 = scmp.ne.s32.totalorder %s1379_s20, %s1375_s19 }
   0x8   : > { %p116_p1 = scmp.eq.s32.totalorder %s115_s26, 0  ;;  %p129_p2 = scmp.eq.s32.totalorder %s1445_s22, 1 }
   0x9   : > { %p134_p3 = scmp.ne.s32.totalorder %s1375_s19, %s1371_s18  ;;  %p135_p4 = scmp.eq.s32.totalorder %s1050_s23, 1 }
   0xa   : > { %s1460_s27 = scalar_select %p116_p1, %s1379_s20, %s118_s25  }
   0xb   : > { %p1462_p5 = por %p129_p2, %p128_p0  ;;  %p1466_p6 = por %p135_p4, %p134_p3 }
   0xc   : > { %p1053_p7 = scmp.ge.s32.totalorder %s1383_s21, 1  ;;  %p197_p8 = scmp.lt.s32.totalorder %s1383_s21, 3 }
   0xe   : > { %p198_p9 = pnand %p1053_p7, %p197_p8 }
   0xf   : > { %s1056_s30 = sshll.u32 (!%p198_p9), %s1445_s22, 4  ;;  %v1385_v0 = vmov (!%p198_p9), 0.0|0.0   ;;  %vm1386_vm0 = vmmov (!%p198_p9), 0   ;;  %v1387_v1 = vmov (!%p198_p9), 0.0   ;;  %v253_v2 = vld [vmem:[%s1630_s2] sm:$0x3] (!%p198_p9) }
  0x10   : > { %201 = sbr.rel (%p198_p9) target bundleno = 630 (0x276), region = 36  ;;  %1181 = vmatprep.subr.bf16.mxu0 (!%p198_p9), %v1385_v0  ;;  %p231_p10 = scmp.lt.s32.totalorder (!%p198_p9), %s1056_s30, 31  ;;  %1148 = vmatprep.mubr.msk.f32.mxu0 (!%p198_p9), %vm1386_vm0, %v1387_v1  ;;  %v1388_v3 = vmov (!%p198_p9), 0   ;;  %vm259_vm1 = vcmask (!%p198_p9), 261120   ;;  %v252_v29 = vld [vmem:[%s1629_s1] sm:$0x3] (!%p198_p9) }
  0x11   : > { %1274 = vset.pattern.permute.xlu0 (!%p198_p9), %v1388_v3  ;;  %vm1485_vm2 = vmpackc.low (!%p198_p9), %vm259_vm1, %vm259_vm1  ;;  %v423_v30 = vld [vmem:[%s1631_s3] sm:$0xff] (!%p198_p9)  ;;  %vm425_vm3 = vcmask (!%p198_p9), 64512   ;;  %v424_v54 = vld [vmem:[%s1631_s3 + $0x8] sm:$0xff] (!%p198_p9)  ;;  %s1541_s23 = sand.u32 (!%p198_p9), 1, %s1375_s19   ;;  %vm417_vm4 = vcmask (!%p198_p9), 1040384   ;;  %vm419_vm5 = vcmask (!%p198_p9), 1041408  }
  0x12   : > { %256 = vperm.xlu0 (!%p198_p9), %1274, %v253_v2   ;;  %v427_v31 = vsel (!%p198_p9), %vm425_vm3, %v423_v30, 0  ;;  %v430_v59 = vsel (!%p198_p9), %vm425_vm3, %v424_v54, 0  ;;  %s1055_s25 = sshll.u32 (!%p198_p9), %s1541_s23, 1  ;;  %vm421_vm6 = vcmask (!%p198_p9), 1042432   ;;  %s931_s10 = scalar_lea.sflag (!%p198_p9), [#allocation5], %s1541_s23 }
  0x13   : > { %v1527_v32 = vand.u32 (!%p198_p9), 4294901760, %v427_v31  ;;  %v508_v61 = vand.u32 (!%p198_p9), 4294901760, %v430_v59  ;;  %s1544_s26 = scalar_lea.vmem (!%p198_p9), [#allocation4], %s1055_s25  ;;  %s1389_s12 = smov (!%p198_p9), [#allocation4]  }
  0x14   : > { %s959_s9 = sshll.u32 (!%p198_p9), %s1544_s26, 4  ;;  %s1293_s13 = sshll.u32 (!%p198_p9), %s1389_s12, 4  ;;  %s960_s9 = int_to_ptr.vmem [resolvable:$true] %s959_s9  ;;  %s1294_s13 = int_to_ptr.vmem [resolvable:$false] %s1293_s13 }
  0x15   : > { %v1530_v33 = vsub.f32 (!%p198_p9), %v427_v31, %v1527_v32  ;;  %v509_v62 = vsub.f32 (!%p198_p9), %v430_v59, %v508_v61  ;;  %s1295_s14 = scalar_lea.vmem (!%p198_p9), %s1294_s13, 64  ;;  %p1296_p0 = scmp.lt.s32.totalorder (!%p198_p9), %s960_s9, %s1294_s13 }
  0x17   : > { %s1643_s30 = smov (!%p231_p10, %s1056_s30), 31  ;;  %v500_v34 = vand.u32 4294901760, %v1530_v33 }
  0x18   : > { %s1057_s8 = sshll.u32 %s1643_s30, 3  ;;  %s1078_s30 = sshll.u32 %s1445_s22, 5 }
  0x19   : > { %s1479_s11 = scalar_lea.vmem %s1628_s0, %s1057_s8  ;;  %v501_v35 = vsub.f32 %v1530_v33, %v500_v34  ;;  %s1557_s8 = scalar_lea.hbm %s1633_s5, %s1078_s30 }
  0x1a   : > { %v236_v4 = vld [vmem:[%s1479_s11] sm:$0xff]  ;;  %v237_v5 = vld [vmem:[%s1479_s11 + $0x8] sm:$0xff]  ;;  %v238_v8 = vld [vmem:[%s1479_s11 + $0x10] sm:$0xff] }
  0x1b   : > { %v1182_v7 = vpack.c.bf16 %v237_v5, %v236_v4  ;;  %v239_v9 = vld [vmem:[%s1479_s11 + $0x18] sm:$0xff]  ;;  %v240_v11 = vld [vmem:[%s1479_s11 + $0x20] sm:$0xff]  ;;  %v241_v12 = vld [vmem:[%s1479_s11 + $0x28] sm:$0xff]  ;;  %v502_v36 = vand.u32 4294901760, %v501_v35  ;;  %v510_v5 = vand.u32 4294901760, %v509_v62 }
  0x1c   : > { %v1186_v10 = vpack.c.bf16 %v239_v9, %v238_v8  ;;  %v1190_v13 = vpack.c.bf16 %v241_v12, %v240_v11  ;;  %v242_v14 = vld [vmem:[%s1479_s11 + $0x30] sm:$0xff]  ;;  %v243_v15 = vld [vmem:[%s1479_s11 + $0x38] sm:$0xff]  ;;  %v244_v17 = vld [vmem:[%s1479_s11 + $0x40] sm:$0xff] }
  0x1d   : > { %1184 = vmatpush3.bf16.xpose.msk.msra.mxu0 %vm1485_vm2, %v1182_v7  ;;  %v1194_v16 = vpack.c.bf16 %v243_v15, %v242_v14  ;;  %v245_v18 = vld [vmem:[%s1479_s11 + $0x48] sm:$0xff]  ;;  %v246_v20 = vld [vmem:[%s1479_s11 + $0x50] sm:$0xff]  ;;  %v247_v21 = vld [vmem:[%s1479_s11 + $0x58] sm:$0xff]  ;;  %1153 = vmatprep.mubr.f32.mxu1 %v502_v36  ;;  %v511_v11 = vsub.f32 %v509_v62, %v510_v5 }
  0x1e   : > { %1185 = vmatprep.subr.bf16.mxu0 %v1385_v0  ;;  %v1198_v19 = vpack.c.bf16 %v245_v18, %v244_v17  ;;  %v1202_v22 = vpack.c.bf16 %v247_v21, %v246_v20  ;;  %v248_v23 = vld [vmem:[%s1479_s11 + $0x60] sm:$0xff]  ;;  %v249_v24 = vld [vmem:[%s1479_s11 + $0x68] sm:$0xff]  ;;  %v250_v26 = vld [vmem:[%s1479_s11 + $0x70] sm:$0xff] }
  0x1f   : > { %v1206_v25 = vpack.c.bf16 %v249_v24, %v248_v23  ;;  %v251_v27 = vld [vmem:[%s1479_s11 + $0x78] sm:$0xff]  ;;  %s1289_s11 = scalar_lea.vmem %s960_s9, 32 }
  0x20   : > { %v1210_v28 = vpack.c.bf16 %v251_v27, %v250_v26  ;;  %p1290_p11 = scmp.ne.s32.totalorder %s960_s9, %s1289_s11  ;;  %p1297_p1 = scmp.lt.s32.totalorder %s1295_s14, %s1289_s11 }
  0x22   : > { %p1291_p12 = pnand %p1290_p11, %p1462_p5  ;;  %p1298_p2 = por %p1297_p1, %p1296_p0 }
  0x24   : > { %p1292_p13 = pneg %p1291_p12 }
  0x25   : > { %1188 = vmatpush3.bf16.xpose.msk.msra.mxu0 %vm1485_vm2, %v1186_v10 }
  0x26   : > { %1189 = vmatprep.subr.bf16.mxu0 %v1385_v0  ;;  %p1299_p3 = pnand %p1298_p2, %p1292_p13 }
  0x2d   : > { %1192 = vmatpush3.bf16.xpose.msk.msra.mxu0 %vm1485_vm2, %v1190_v13 }
  0x2e   : > { %1193 = vmatprep.subr.bf16.mxu0 %v1385_v0 }
  0x35   : > { %1196 = vmatpush3.bf16.xpose.msk.msra.mxu0 %vm1485_vm2, %v1194_v16  ;;  %v512_v16 = vand.u32 4294901760, %v511_v11 }
  0x36   : > { %1197 = vmatprep.subr.bf16.mxu0 %v1385_v0 }
  0x3d   : > { %1200 = vmatpush3.bf16.xpose.msk.msra.mxu0 %vm1485_vm2, %v1198_v19 }
  0x3e   : > { %1201 = vmatprep.subr.bf16.mxu0 %v1385_v0 }
  0x45   : > { %1204 = vmatpush3.bf16.xpose.msk.msra.mxu0 %vm1485_vm2, %v1202_v22 }
  0x46   : > { %1205 = vmatprep.subr.bf16.mxu0 %v1385_v0 }
  0x4d   : > { %1208 = vmatpush3.bf16.xpose.msk.msra.mxu0 %vm1485_vm2, %v1206_v25 }
  0x4e   : > { %1209 = vmatprep.subr.bf16.mxu0 %v1385_v0 }
  0x55   : > { %1212 = vmatpush3.bf16.xpose.msk.msra.mxu0 %vm1485_vm2, %v1210_v28 }
  0x5c   : > { %1149 = vmatmul.mubr.msk.f32.vlgmr.msra.gmra.mrb[0].mxu0 %vm259_vm1, %v252_v29 }
  0x91   : > { %v257_v37 = vpop.permute.xlu0 %256 }
 0x12f   : > { %v377_v38 = vpop.f32.mrb[0].mxu0 }
 0x130   : > { %v378_v39 = vadd.f32 %v377_v38, %v257_v37  ;;  %v1150_v40 = vpop.f32.mrb[1].mxu0 }
 0x132   : > { %v381_v41 = vsub.f32 0.0, %v378_v39  ;;  %v388_v42 = vand.u32 2147483647, %v378_v39  ;;  %v387_v55 = vmax.f32 %v378_v39, 0.0 }
 0x134   : > { %v382_v43 = vmul.f32 1.442695, %v381_v41  ;;  %v389_v44 = vsub.f32 0.0, %v388_v42 }
 0x136   : > { %1275 = vpow2.f32 %v382_v43  ;;  %v390_v45 = vmul.f32 1.442695, %v389_v44 }
 0x138   : > { %1277 = vpow2.f32 %v390_v45 }
 0x140   : > { %v1276_v46 = vpop.eup %1275 }
 0x141   : > { %v384_v47 = vadd.f32 1.0, %v1276_v46 }
 0x142   : > { %v1278_v48 = vpop.eup %1277 }
 0x143   : > { %1279 = vrcp.f32 %v384_v47  ;;  %v392_v49 = vadd.f32 1.0, %v1278_v48 }
 0x145   : > { %1281 = vlog2.f32 %v392_v49 }
 0x14d   : > { %v1280_v50 = vpop.eup %1279 }
 0x14e   : > { %v399_v51 = vadd.f32 1e-06, %v1280_v50  ;;  %v402_v52 = vsub.f32 1.0, %v1280_v50 }
 0x14f   : > { %v1282_v53 = vpop.eup %1281 }
 0x150   : > { %v394_v56 = vmul.f32 0.6931472, %v1282_v53  ;;  %1283 = vlog2.f32 %v399_v51  ;;  %v403_v57 = vadd.f32 1e-06, %v402_v52 }
 0x152   : > { %v395_v58 = vadd.f32 %v394_v56, %v387_v55  ;;  %1285 = vlog2.f32 %v403_v57 }
 0x154   : > { %v396_v60 = vadd.f32 1.0, %v395_v58 }
 0x156   : > { %1287 = vrcp.f32 %v396_v60  ;;  %v407_v1 = vrot.slane %v396_v60, 1 }
 0x15a   : > { %v1284_v63 = vpop.eup %1283 }
 0x15b   : > { %v401_v0 = vmul.f32 0.6931472, %v1284_v63 }
 0x15c   : > { %v1286_v2 = vpop.eup %1285 }
 0x15d   : > { %v405_v3 = vmul.f32 0.6931472, %v1286_v2  ;;  %v409_v4 = vmul.f32 %v407_v1, %v401_v0 }
 0x15f   : > { %v410_v6 = vmul.f32 %v407_v1, %v405_v3  ;;  %v412_v7 = vrot.slane %v409_v4, 7 }
 0x160   : > { %v1288_v8 = vpop.eup %1287 }
 0x161   : > { %v415_v9 = vrot.slane %v410_v6, 6  ;;  %v418_v10 = vsel %vm417_vm4, %v407_v1, %v412_v7  ;;  %v923_v12 = vsel %vm417_vm4, %v1280_v50, %v1288_v8 }
 0x162   : > { %924 = vst [vmem:[%s1544_s26] sm:$0x3] %v923_v12 }
 0x163   : > { %v420_v13 = vsel %vm419_vm5, %v418_v10, %v415_v9 }
 0x164   : > { %v422_v14 = vsel %vm421_vm6, %v420_v13, 0.0 }
 0x165   : > { %v433_v15 = vand.u32 4294901760, %v422_v14 }
 0x167   : > { %1151 = vmatprep.subr.mxu1 %v433_v15  ;;  %v520_v17 = vsub.f32 %v422_v14, %v433_v15 }
 0x168   : > { %1152 = vmatpush3.msra.mxu1 %v433_v15 }
 0x169   : > { %1154 = vmatmul.mubr.f32.vlgmr.msra.gmra.mrb[0].mxu1 %v512_v16  ;;  %v521_v18 = vand.u32 4294901760, %v520_v17 }
 0x16a   : > { %1158 = vmatprep.mubr.f32.mxu1 %v1527_v32 }
 0x16b   : > { %v522_v19 = vsub.f32 %v520_v17, %v521_v18 }
 0x16d   : > { %v523_v20 = vand.u32 4294901760, %v522_v19 }
 0x16f   : > { %1156 = vmatprep.subr.mxu1 %v523_v20 }
 0x170   : > { %1157 = vmatpush3.msra.mxu1 %v523_v20 }
 0x171   : > { %1159 = vmatmul.mubr.f32.vlgmr.msra.gmra.mrb[0].mxu1 %v508_v61  ;;  %1161 = vmatprep.subr.mxu1 %v520_v17 }
 0x172   : > { %1162 = vmatpush3.msra.mxu1 %v520_v17  ;;  %1163 = vmatprep.mubr.f32.mxu1 %v1530_v33 }
 0x173   : > { %1166 = vmatprep.subr.mxu1 %v433_v15 }
 0x179   : > { %1164 = vmatmul.mubr.f32.vlgmr.msra.gmra.mrb[0].mxu1 %v509_v62 }
 0x17a   : > { %1167 = vmatpush3.msra.mxu1 %v433_v15  ;;  %1168 = vmatprep.mubr.f32.mxu1 %v500_v34 }
 0x17b   : > { %1171 = vmatprep.subr.mxu1 %v521_v18 }
 0x181   : > { %1169 = vmatmul.mubr.f32.vlgmr.msra.gmra.mrb[0].mxu1 %v510_v5 }
 0x182   : > { %1172 = vmatpush3.msra.mxu1 %v521_v18  ;;  %1173 = vmatprep.mubr.f32.mxu1 %v1527_v32 }
 0x183   : > { %1176 = vmatprep.subr.mxu1 %v433_v15 }
 0x189   : > { %1174 = vmatmul.mubr.f32.vlgmr.msra.gmra.mrb[0].mxu1 %v508_v61 }
 0x18a   : > { %1177 = vmatpush3.msra.mxu1 %v433_v15  ;;  %1178 = vmatprep.mubr.f32.mxu1 %v1527_v32 }
 0x191   : > { %1179 = vmatmul.mubr.f32.vlgmr.msra.gmra.mrb[0].mxu1 %v508_v61 }
 0x192   : > { %1302 = shalt.err (!%p1299_p3)
}
 0x193   : > { %s1303_s15 = scalar_lea.hbm %s1557_s8, 32  ;;  %s1307_s25 = scalar_lea.hbm %s1633_s5, 64 }
 0x194   : > { %p1304_p4 = scmp.ne.s32.totalorder %s1557_s8, %s1303_s15  ;;  %p1308_p9 = scmp.lt.u32.totalorder %s1557_s8, %s1633_s5 }
 0x195   : > { %p1309_p10 = scmp.lt.u32.totalorder %s1307_s25, %s1303_s15  ;;  %p1311_p12 = scmp.lt.u32.totalorder %s1303_s15, %s1557_s8 }
 0x196   : > { %p1305_p7 = pnand %p1304_p4, %p1462_p5 }
 0x197   : > { %p1310_p11 = por %p1309_p10, %p1308_p9 }
 0x198   : > { %p1306_p8 = pneg %p1305_p7 }
 0x199   : > { %p1312_p13 = por %p1311_p12, %p1310_p11 }
 0x19b   : > { %p1313_p0 = pnand %p1312_p13, %p1306_p8 }
 0x19d   : > { %1316 = shalt.err (!%p1313_p0)
}
 0x19e   : > { %1224 = dma.vmem_to_hbm [thread:$0]  (%p1462_p5), %s960_s9, 32, %s1557_s8, %s931_s10  }
 0x19f   : > { %s1054_s6 = sshll.u32 %s1541_s23, 4  ;;  %s1077_s12 = sshll.u32 %s1445_s22, 7 }
 0x1a0   : > { %s222_s7 = scalar_lea.vmem [#allocation2], %s1054_s6  ;;  %s1585_s15 = scalar_lea.hbm %s1632_s4, %s1077_s12 }
 0x1a1   : > { %s943_s11 = sshll.u32 %s222_s7, 4  ;;  %s926_s16 = scalar_lea.sflag [#allocation3], %s1541_s23  ;;  %s1580_s11 = int_to_ptr.vmem [resolvable:$true] %s943_s11 }
 0x1a2   : > { %s1317_s8 = scalar_lea.vmem %s1580_s11, 256  ;;  %s1390_s22 = smov [#allocation2]  }
 0x1a3   : > { %p1318_p1 = scmp.ne.s32.totalorder %s1580_s11, %s1317_s8  ;;  %s1321_s9 = sshll.u32 %s1390_s22, 4  ;;  %s1322_s9 = int_to_ptr.vmem [resolvable:$false] %s1321_s9 }
 0x1a4   : > { %s1323_s10 = scalar_lea.vmem %s1322_s9, 512  ;;  %p1324_p4 = scmp.lt.s32.totalorder %s1580_s11, %s1322_s9 }
 0x1a5   : > { %p1319_p2 = pnand %p1318_p1, %p1462_p5  ;;  %p1325_p7 = scmp.lt.s32.totalorder %s1323_s10, %s1317_s8 }
 0x1a7   : > { %p1320_p3 = pneg %p1319_p2  ;;  %p1326_p8 = por %p1325_p7, %p1324_p4 }
 0x1a9   : > { %p1327_p9 = pnand %p1326_p8, %p1320_p3 }
 0x264   : > { %v1180_v21 = vpop.f32.mrb[0].mxu1 }
 0x265   : > { %922 = vst [vmem:[%s222_s7 + $0x8] sm:$0xff] %v1180_v21  ;;  %v911_v22 = vpop.f32.mrb[1].mxu1 }
 0x266   : > { %921 = vst [vmem:[%s222_s7] sm:$0xff] %v911_v22 }
 0x267   : > { %1330 = shalt.err (!%p1327_p9)
}
 0x268   : > { %s1331_s17 = scalar_lea.hbm %s1585_s15, 256  ;;  %s1335_s30 = scalar_lea.hbm %s1632_s4, 512 }
 0x269   : > { %p1332_p10 = scmp.ne.s32.totalorder %s1585_s15, %s1331_s17  ;;  %p1336_p13 = scmp.lt.u32.totalorder %s1585_s15, %s1632_s4 }
 0x26a   : > { %p1337_p0 = scmp.lt.u32.totalorder %s1335_s30, %s1331_s17  ;;  %p1339_p2 = scmp.lt.u32.totalorder %s1331_s17, %s1585_s15 }
 0x26b   : > { %p1333_p11 = pnand %p1332_p10, %p1462_p5 }
 0x26c   : > { %p1338_p1 = por %p1337_p0, %p1336_p13 }
 0x26d   : > { %p1334_p12 = pneg %p1333_p11 }
 0x26e   : > { %p1340_p3 = por %p1339_p2, %p1338_p1 }
 0x270   : > { %p1341_p4 = pnand %p1340_p3, %p1334_p12 }
 0x272   : > { %1344 = shalt.err (!%p1341_p4)
}
 0x273   : > { %s1391_s12 = smov 128   ;;  %s1392_s13 = smov 256  }
 0x274   : > { %s1393_s14 = smov 8  }
 0x275   : > { %1223 = dma.vmem_to_hbm [thread:$0]  (%p1462_p5), %s1580_s11, 256, %s1585_s15, %s926_s16, %s1391_s12, %s1392_s13, %s1393_s14  }
 0x276 PF: > { %p1234_p7 = scmp.ge.s32.totalorder %s1383_s21, 2  ;;  %s971_s8 = sand.u32 1, %s1371_s18  }
 0x277   : > { %s972_s22 = scalar_lea.sflag [#allocation3], %s971_s8 }
 0x278   : > { %p1228_p8 = pnand %p1234_p7, %p1466_p6 }
 0x27a   : > { %1362 = dma.done.wait (!%p1228_p8), %s972_s22, 256  }
 0x27b   : > { %1364 = vsyncadd (!%p1228_p8), %s972_s22, 4294967040  ;;  %s981_s9 = scalar_lea.sflag [#allocation5], %s971_s8 }
 0x27c   : > { %1366 = dma.done.wait (!%p1228_p8), %s981_s9, 32  }
 0x27d   : > { %1368 = vsyncadd (!%p1228_p8), %s981_s9, 4294967264  ;;  %p19_p5 = scmp.ge.s32.totalorder %s1449_s24, 4   ;;  %s1638_s18 = smov %s1375_s19 }
 0x27e   : > { %s1639_s19 = smov %s1379_s20  ;;  %s1640_s20 = smov %s1460_s27 }
 0x27f   : > { %s1641_s21 = smov %s1449_s24  ;;  %21 = sbr.rel (!%p19_p5) target bundleno = 5 (0x5), region = 88 }
 0x286   :  { %986 = vsyncpa [#allocation3], 1 }
 0x287   :  { %988 = vsyncpa [#allocation3 + $0x1], 1 }
 0x288   :  { %989 = vsyncpa [#allocation5], 1 }
 0x289   :  { %991 = vsyncpa [#allocation5 + $0x1], 1 }

</bundles_post_ra>
